<compile_context>
chip_gen: v7x
topology: tpu7x:2x2x1
jax: 0.10.0
libtpu: 0.0.40
codegen_flags: <defaults>
</compile_context>

<pallas_src>
import functools

import jax
import jax.numpy as jnp
from jax.experimental import pallas as pl
from jax.experimental.pallas import tpu as pltpu

_LANE = 128
_SUBLANE = 8


def _round_up(n, m):
    return ((n + m - 1) // m) * m


def _make_mlp_kernel(total_layers):
    """total_layers = num_layers + 2 (input proj + hidden layers + output proj)."""

    def kernel(*refs):
        x_ref = refs[0]
        out_ref = refs[-1]
        param_refs = refs[1:-1]  # interleaved (w0, b0, w1, b1, ...)

        h = x_ref[...]
        for i in range(total_layers):
            w = param_refs[2 * i][...]
            b = param_refs[2 * i + 1][...]
            h = jnp.dot(h, w, preferred_element_type=jnp.float32) + b
            if i < total_layers - 1:  # ReLU on all but the final layer
                h = jnp.maximum(h, 0.0)
        out_ref[...] = h.astype(out_ref.dtype)

    return kernel


@functools.partial(jax.jit, static_argnames=("block_m",))
def mlp_block_forward(x, weights, biases, *, block_m=256):
    """Fused MLP forward.

    x:        [B, in_dim] float32
    weights:  tuple of [d_in_i, d_out_i] float32 (PyTorch weight transposed)
    biases:   tuple of [1, d_out_i] float32
    """
    assert block_m % _SUBLANE == 0, "block_m must be a multiple of 8"
    B, in_dim = x.shape
    out_dim = weights[-1].shape[1]
    total_layers = len(weights)

    # ---- zero-pad feature dims to lane multiples, batch to block_m multiple.
    dims = [in_dim] + [w.shape[1] for w in weights]
    pdims = [_round_up(d, _LANE) for d in dims]
    Bp = _round_up(B, block_m)

    xp = jnp.pad(x, ((0, Bp - B), (0, pdims[0] - in_dim)))

    params = []
    param_specs = []
    for li, (w, b) in enumerate(zip(weights, biases)):
        wp = jnp.pad(w, ((0, pdims[li] - w.shape[0]),
                         (0, pdims[li + 1] - w.shape[1])))
        bp = jnp.pad(b, ((0, 0), (0, pdims[li + 1] - b.shape[1])))
        params.extend([wp, bp])
        param_specs.append(pl.BlockSpec(wp.shape, lambda i: (0, 0)))
        param_specs.append(pl.BlockSpec(bp.shape, lambda i: (0, 0)))

    out_p = pdims[-1]
    grid = (Bp // block_m,)

    # Advisory scheduler hint (padded problem size).
    flops = 2 * Bp * sum(a * b for a, b in zip(pdims[:-1], pdims[1:]))
    bytes_accessed = (
        xp.size * xp.dtype.itemsize
        + sum(int(p.size) * p.dtype.itemsize for p in params)
        + Bp * out_p * xp.dtype.itemsize
    )

    kernel = _make_mlp_kernel(total_layers)

    out_padded = pl.pallas_call(
        kernel,
        out_shape=jax.ShapeDtypeStruct((Bp, out_p), x.dtype),
        grid_spec=pltpu.PrefetchScalarGridSpec(
            num_scalar_prefetch=0,
            grid=grid,
            in_specs=[pl.BlockSpec((block_m, pdims[0]), lambda i: (i, 0))]
            + param_specs,
            out_specs=pl.BlockSpec((block_m, out_p), lambda i: (i, 0)),
        ),
        compiler_params=pltpu.CompilerParams(
            dimension_semantics=("parallel",),
            vmem_limit_bytes=32 << 20,
        ),
        cost_estimate=pl.CostEstimate(
            flops=int(flops),
            transcendentals=0,
            bytes_accessed=int(bytes_accessed),
        ),
    )(xp, *params)

    return out_padded[:B, :out_dim]


def init_mlp_params(key, in_dim, h_nodes, num_layers, out_dim):
    """Init mirroring the PyTorch module's layer shapes.

    Weights: Xavier-uniform (nn.init.xavier_uniform_).
    Biases:  PyTorch nn.Linear default U(-1/sqrt(fan_in), 1/sqrt(fan_in)).
    Weights are stored transposed: [in_features, out_features].
    """
    dims = [in_dim] + [h_nodes] * (num_layers + 1) + [out_dim]
    weights, biases = [], []
    for d_in, d_out in zip(dims[:-1], dims[1:]):
        key, kw, kb = jax.random.split(key, 3)
        limit = (6.0 / (d_in + d_out)) ** 0.5
        w = jax.random.uniform(kw, (d_in, d_out), jnp.float32, -limit, limit)
        b_bound = 1.0 / (d_in ** 0.5)
        b = jax.random.uniform(kb, (1, d_out), jnp.float32, -b_bound, b_bound)
        weights.append(w)
        biases.append(b)
    return tuple(weights), tuple(biases)


def mlp_reference(x, weights, biases):
    """Pure-JAX reference matching MLPBlock.forward."""
    h = x
    for i, (w, b) in enumerate(zip(weights, biases)):
        h = h @ w + b
        if i < len(weights) - 1:
            h = jnp.maximum(h, 0.0)
    return h


if __name__ == "__main__":
    # Small shapes consistent with the module; B=500 is deliberately NOT a
    # multiple of block_m (exercises batch padding) and yields a 2-step grid
    # (so both TensorCores are used on v7x).
    B = 500
    in_dim = 4
    h_nodes = 32
    num_layers = 2
    out_dim = 4

    key = jax.random.PRNGKey(0)
    key, kx = jax.random.split(key)
    x = jax.random.normal(kx, (B, in_dim), jnp.float32)

    weights, biases = init_mlp_params(key, in_dim, h_nodes, num_layers, out_dim)

    out = mlp_block_forward(x, weights, biases, block_m=256)
    out = jax.block_until_ready(out)

    ref = mlp_reference(x, weights, biases)
    assert out.shape == (B, out_dim)
    assert jnp.allclose(out, ref, atol=1e-5, rtol=1e-5), "mismatch vs reference"

    print("KERNEL_OK")
</pallas_src>

<mosaic_0001>
module attributes {stable_mosaic.version = 11 : i64} {
  func.func @kernel(%arg0: i32, %arg1: memref<256x128xf32, #tpu.memory_space<vmem>>, %arg2: memref<128x128xf32, #tpu.memory_space<vmem>>, %arg3: memref<1x128xf32, #tpu.memory_space<vmem>>, %arg4: memref<128x128xf32, #tpu.memory_space<vmem>>, %arg5: memref<1x128xf32, #tpu.memory_space<vmem>>, %arg6: memref<128x128xf32, #tpu.memory_space<vmem>>, %arg7: memref<1x128xf32, #tpu.memory_space<vmem>>, %arg8: memref<128x128xf32, #tpu.memory_space<vmem>>, %arg9: memref<1x128xf32, #tpu.memory_space<vmem>>, %arg10: memref<256x128xf32, #tpu.memory_space<vmem>>) attributes {dimension_semantics = [#tpu.dimension_semantics<parallel>], iteration_bounds = array<i64: 2>, scalar_prefetch = 0 : i64, scratch_operands = 0 : i64, tpu.core_type = #tpu.core_type<tc>, window_params = [{transform_indices = @transform_0, window_bounds = array<i64: 256, 128>}, {pipeline_mode = #tpu.pipeline_mode<synchronous>, transform_indices = @transform_1, window_bounds = array<i64: 128, 128>}, {pipeline_mode = #tpu.pipeline_mode<synchronous>, transform_indices = @transform_2, window_bounds = array<i64: 1, 128>}, {pipeline_mode = #tpu.pipeline_mode<synchronous>, transform_indices = @transform_3, window_bounds = array<i64: 128, 128>}, {pipeline_mode = #tpu.pipeline_mode<synchronous>, transform_indices = @transform_4, window_bounds = array<i64: 1, 128>}, {pipeline_mode = #tpu.pipeline_mode<synchronous>, transform_indices = @transform_5, window_bounds = array<i64: 128, 128>}, {pipeline_mode = #tpu.pipeline_mode<synchronous>, transform_indices = @transform_6, window_bounds = array<i64: 1, 128>}, {pipeline_mode = #tpu.pipeline_mode<synchronous>, transform_indices = @transform_7, window_bounds = array<i64: 128, 128>}, {pipeline_mode = #tpu.pipeline_mode<synchronous>, transform_indices = @transform_8, window_bounds = array<i64: 1, 128>}, {transform_indices = @transform_9, window_bounds = array<i64: 256, 128>}]} {
    %c0 = arith.constant 0 : index
    %c0_0 = arith.constant 0 : index
    %0 = vector.load %arg1[%c0, %c0_0] : memref<256x128xf32, #tpu.memory_space<vmem>>, vector<256x128xf32>
    %c0_1 = arith.constant 0 : index
    %c0_2 = arith.constant 0 : index
    %1 = vector.load %arg2[%c0_1, %c0_2] : memref<128x128xf32, #tpu.memory_space<vmem>>, vector<128x128xf32>
    %c0_3 = arith.constant 0 : index
    %c0_4 = arith.constant 0 : index
    %2 = vector.load %arg3[%c0_3, %c0_4] : memref<1x128xf32, #tpu.memory_space<vmem>>, vector<1x128xf32>
    %cst = arith.constant dense<0.000000e+00> : vector<256x128xf32>
    %3 = tpu.matmul %0, %1, %cst {dimension_numbers = #tpu.dot_dimension_numbers<[1], [0], [0], [1], [0, 0, 1, 1], [], []>} : vector<256x128xf32>, vector<128x128xf32>, vector<256x128xf32> -> vector<256x128xf32>
    %4 = vector.broadcast %2 : vector<1x128xf32> to vector<256x128xf32>
    %5 = arith.addf %3, %4 : vector<256x128xf32>
    %cst_5 = arith.constant 0.000000e+00 : f32
    %6 = vector.broadcast %cst_5 : f32 to vector<256x128xf32>
    %7 = arith.maximumf %5, %6 : vector<256x128xf32>
    %c0_6 = arith.constant 0 : index
    %c0_7 = arith.constant 0 : index
    %8 = vector.load %arg4[%c0_6, %c0_7] : memref<128x128xf32, #tpu.memory_space<vmem>>, vector<128x128xf32>
    %c0_8 = arith.constant 0 : index
    %c0_9 = arith.constant 0 : index
    %9 = vector.load %arg5[%c0_8, %c0_9] : memref<1x128xf32, #tpu.memory_space<vmem>>, vector<1x128xf32>
    %cst_10 = arith.constant dense<0.000000e+00> : vector<256x128xf32>
    %10 = tpu.matmul %7, %8, %cst_10 {dimension_numbers = #tpu.dot_dimension_numbers<[1], [0], [0], [1], [0, 0, 1, 1], [], []>} : vector<256x128xf32>, vector<128x128xf32>, vector<256x128xf32> -> vector<256x128xf32>
    %11 = vector.broadcast %9 : vector<1x128xf32> to vector<256x128xf32>
    %12 = arith.addf %10, %11 : vector<256x128xf32>
    %cst_11 = arith.constant 0.000000e+00 : f32
    %13 = vector.broadcast %cst_11 : f32 to vector<256x128xf32>
    %14 = arith.maximumf %12, %13 : vector<256x128xf32>
    %c0_12 = arith.constant 0 : index
    %c0_13 = arith.constant 0 : index
    %15 = vector.load %arg6[%c0_12, %c0_13] : memref<128x128xf32, #tpu.memory_space<vmem>>, vector<128x128xf32>
    %c0_14 = arith.constant 0 : index
    %c0_15 = arith.constant 0 : index
    %16 = vector.load %arg7[%c0_14, %c0_15] : memref<1x128xf32, #tpu.memory_space<vmem>>, vector<1x128xf32>
    %cst_16 = arith.constant dense<0.000000e+00> : vector<256x128xf32>
    %17 = tpu.matmul %14, %15, %cst_16 {dimension_numbers = #tpu.dot_dimension_numbers<[1], [0], [0], [1], [0, 0, 1, 1], [], []>} : vector<256x128xf32>, vector<128x128xf32>, vector<256x128xf32> -> vector<256x128xf32>
    %18 = vector.broadcast %16 : vector<1x128xf32> to vector<256x128xf32>
    %19 = arith.addf %17, %18 : vector<256x128xf32>
    %cst_17 = arith.constant 0.000000e+00 : f32
    %20 = vector.broadcast %cst_17 : f32 to vector<256x128xf32>
    %21 = arith.maximumf %19, %20 : vector<256x128xf32>
    %c0_18 = arith.constant 0 : index
    %c0_19 = arith.constant 0 : index
    %22 = vector.load %arg8[%c0_18, %c0_19] : memref<128x128xf32, #tpu.memory_space<vmem>>, vector<128x128xf32>
    %c0_20 = arith.constant 0 : index
    %c0_21 = arith.constant 0 : index
    %23 = vector.load %arg9[%c0_20, %c0_21] : memref<1x128xf32, #tpu.memory_space<vmem>>, vector<1x128xf32>
    %cst_22 = arith.constant dense<0.000000e+00> : vector<256x128xf32>
    %24 = tpu.matmul %21, %22, %cst_22 {dimension_numbers = #tpu.dot_dimension_numbers<[1], [0], [0], [1], [0, 0, 1, 1], [], []>} : vector<256x128xf32>, vector<128x128xf32>, vector<256x128xf32> -> vector<256x128xf32>
    %25 = vector.broadcast %23 : vector<1x128xf32> to vector<256x128xf32>
    %26 = arith.addf %24, %25 : vector<256x128xf32>
    %c0_23 = arith.constant 0 : index
    %c0_24 = arith.constant 0 : index
    %27 = vector.load %arg10[%c0_23, %c0_24] : memref<256x128xf32, #tpu.memory_space<vmem>>, vector<256x128xf32>
    tpu.vector_store %arg10[%c0_23, %c0_24], %26 {strides = array<i32>} : memref<256x128xf32, #tpu.memory_space<vmem>>, vector<256x128xf32>,
    return
  }
  func.func @transform_0(%arg0: i32) -> (i32, i32) {
    %c0_i32 = arith.constant 0 : i32
    %c0_i32_0 = arith.constant 0 : i32
    return %arg0, %c0_i32 : i32, i32
  }
  func.func @transform_1(%arg0: i32) -> (i32, i32) {
    %c0_i32 = arith.constant 0 : i32
    %c0_i32_0 = arith.constant 0 : i32
    %c0_i32_1 = arith.constant 0 : i32
    return %c0_i32, %c0_i32_0 : i32, i32
  }
  func.func @transform_2(%arg0: i32) -> (i32, i32) {
    %c0_i32 = arith.constant 0 : i32
    %c0_i32_0 = arith.constant 0 : i32
    %c0_i32_1 = arith.constant 0 : i32
    return %c0_i32, %c0_i32_0 : i32, i32
  }
  func.func @transform_3(%arg0: i32) -> (i32, i32) {
    %c0_i32 = arith.constant 0 : i32
    %c0_i32_0 = arith.constant 0 : i32
    %c0_i32_1 = arith.constant 0 : i32
    return %c0_i32, %c0_i32_0 : i32, i32
  }
  func.func @transform_4(%arg0: i32) -> (i32, i32) {
    %c0_i32 = arith.constant 0 : i32
    %c0_i32_0 = arith.constant 0 : i32
    %c0_i32_1 = arith.constant 0 : i32
    return %c0_i32, %c0_i32_0 : i32, i32
  }
  func.func @transform_5(%arg0: i32) -> (i32, i32) {
    %c0_i32 = arith.constant 0 : i32
    %c0_i32_0 = arith.constant 0 : i32
    %c0_i32_1 = arith.constant 0 : i32
    return %c0_i32, %c0_i32_0 : i32, i32
  }
  func.func @transform_6(%arg0: i32) -> (i32, i32) {
    %c0_i32 = arith.constant 0 : i32
    %c0_i32_0 = arith.constant 0 : i32
    %c0_i32_1 = arith.constant 0 : i32
    return %c0_i32, %c0_i32_0 : i32, i32
  }
  func.func @transform_7(%arg0: i32) -> (i32, i32) {
    %c0_i32 = arith.constant 0 : i32
    %c0_i32_0 = arith.constant 0 : i32
    %c0_i32_1 = arith.constant 0 : i32
    return %c0_i32, %c0_i32_0 : i32, i32
  }
  func.func @transform_8(%arg0: i32) -> (i32, i32) {
    %c0_i32 = arith.constant 0 : i32
    %c0_i32_0 = arith.constant 0 : i32
    %c0_i32_1 = arith.constant 0 : i32
    return %c0_i32, %c0_i32_0 : i32, i32
  }
  func.func @transform_9(%arg0: i32) -> (i32, i32) {
    %c0_i32 = arith.constant 0 : i32
    %c0_i32_0 = arith.constant 0 : i32
    return %arg0, %c0_i32 : i32, i32
  }
}

</mosaic_0001>

<bundles_post_ra>
// kernel: mlp_block_forward.1
= control target key start
LH: loop header
LB: loop body
LE: loop exit
PB: predicated region body
PF: predicated region fallthrough
CT: control target
= control target key end

     0   :  { %s2265_s30 = smov 0   ;;  %s2697_s0 = inlined_call_operand.vmem [shape: f32[512,128], index: 0, kind: input, shape index: {}]   ;;  %s2698_s1 = inlined_call_operand.vmem [shape: f32[128,128], index: 1, kind: input, shape index: {}]   ;;  %s2699_s2 = inlined_call_operand.vmem [shape: f32[1,128], index: 2, kind: input, shape index: {}]   ;;  %s2700_s3 = inlined_call_operand.vmem [shape: f32[128,128], index: 3, kind: input, shape index: {}]   ;;  %s2701_s4 = inlined_call_operand.vmem [shape: f32[1,128], index: 4, kind: input, shape index: {}]   ;;  %s2702_s5 = inlined_call_operand.vmem [shape: f32[128,128], index: 5, kind: input, shape index: {}]   ;;  %s2703_s6 = inlined_call_operand.vmem [shape: f32[1,128], index: 6, kind: input, shape index: {}]   ;;  %s2704_s7 = inlined_call_operand.vmem [shape: f32[128,128], index: 7, kind: input, shape index: {}]   ;;  %s2705_s8 = inlined_call_operand.vmem [shape: f32[1,128], index: 8, kind: input, shape index: {}]   ;;  %s2706_s9 = inlined_call_operand.vmem [shape: f32[512,128], index: 9, kind: output, shape index: {}]  }
   0x1 LB: > { %s1544_s10 = sadd.s32 4294967295, %s2213_s30   ;;  %p1548_p0 = scmp.ge.s32.totalorder %s2213_s30, 1  ;;  %s2213_s30 = sphi %s2265_s30, %s19_s30  }
   0x2   : > { %p288_p1 = scmp.lt.s32.totalorder %s2213_s30, 3 }
   0x4   : > { %p289_p2 = pnand %p1548_p0, %p288_p1 }
   0x5   : > { %v368_v0 = vld [vmem:[%s2698_s1] sm:$0xff] (!%p289_p2)  ;;  %v369_v1 = vld [vmem:[%s2698_s1 + $0x8] sm:$0xff] (!%p289_p2)  ;;  %v370_v2 = vld [vmem:[%s2698_s1 + $0x10] sm:$0xff] (!%p289_p2)  ;;  %s1549_s17 = sshll.u32 (!%p289_p2), %s1544_s10, 5 }
   0x6   : > { %292 = sbr.rel (%p289_p2) target bundleno = 970 (0x3ca), region = 56  ;;  %v2071_v3 = vpack.c.bf16 (!%p289_p2), %v369_v1, %v368_v0  ;;  %v371_v4 = vld [vmem:[%s2698_s1 + $0x18] sm:$0xff] (!%p289_p2)  ;;  %p325_p3 = scmp.lt.s32.totalorder (!%p289_p2), %s1549_s17, 63  ;;  %v372_v6 = vld [vmem:[%s2698_s1 + $0x20] sm:$0xff] (!%p289_p2)  ;;  %v373_v7 = vld [vmem:[%s2698_s1 + $0x28] sm:$0xff] (!%p289_p2) }
   0x7   : > { %v2075_v5 = vpack.c.bf16 (!%p289_p2), %v371_v4, %v370_v2  ;;  %v2079_v8 = vpack.c.bf16 (!%p289_p2), %v373_v7, %v372_v6  ;;  %v374_v9 = vld [vmem:[%s2698_s1 + $0x30] sm:$0xff] (!%p289_p2)  ;;  %v648_v10 = vld [vmem:[%s2700_s3] sm:$0xff] (!%p289_p2)  ;;  %v649_v11 = vld [vmem:[%s2700_s3 + $0x8] sm:$0xff] (!%p289_p2) }
   0x8   : > { %2072 = vmatprep.subr.bf16.mxu0 (!%p289_p2), %v2071_v3  ;;  %v375_v12 = vld [vmem:[%s2698_s1 + $0x38] sm:$0xff] (!%p289_p2)  ;;  %v2103_v13 = vpack.c.bf16 (!%p289_p2), %v649_v11, %v648_v10  ;;  %v650_v14 = vld [vmem:[%s2700_s3 + $0x10] sm:$0xff] (!%p289_p2)  ;;  %v376_v19 = vld [vmem:[%s2698_s1 + $0x40] sm:$0xff] (!%p289_p2) }
   0x9   : > { %2074 = vmatpush3.bf16.msra.mxu0 (!%p289_p2), %v2071_v3  ;;  %v651_v15 = vld [vmem:[%s2700_s3 + $0x18] sm:$0xff] (!%p289_p2)  ;;  %v2083_v18 = vpack.c.bf16 (!%p289_p2), %v375_v12, %v374_v9  ;;  %v377_v20 = vld [vmem:[%s2698_s1 + $0x48] sm:$0xff] (!%p289_p2)  ;;  %v378_v22 = vld [vmem:[%s2698_s1 + $0x50] sm:$0xff] (!%p289_p2) }
   0xa   : > { %2076 = vmatprep.subr.bf16.mxu0 (!%p289_p2), %v2075_v5  ;;  %v2107_v17 = vpack.c.bf16 (!%p289_p2), %v651_v15, %v650_v14  ;;  %2104 = vmatprep.subr.bf16.mxu1 (!%p289_p2), %v2103_v13  ;;  %v2087_v21 = vpack.c.bf16 (!%p289_p2), %v377_v20, %v376_v19  ;;  %v379_v23 = vld [vmem:[%s2698_s1 + $0x58] sm:$0xff] (!%p289_p2)  ;;  %v652_v24 = vld [vmem:[%s2700_s3 + $0x20] sm:$0xff] (!%p289_p2)  ;;  %v653_v27 = vld [vmem:[%s2700_s3 + $0x28] sm:$0xff] (!%p289_p2) }
   0xb   : > { %2106 = vmatpush3.bf16.msra.mxu1 (!%p289_p2), %v2103_v13  ;;  %v2091_v25 = vpack.c.bf16 (!%p289_p2), %v379_v23, %v378_v22  ;;  %v380_v26 = vld [vmem:[%s2698_s1 + $0x60] sm:$0xff] (!%p289_p2)  ;;  %v381_v28 = vld [vmem:[%s2698_s1 + $0x68] sm:$0xff] (!%p289_p2)  ;;  %v2111_v29 = vpack.c.bf16 (!%p289_p2), %v653_v27, %v652_v24  ;;  %v654_v30 = vld [vmem:[%s2700_s3 + $0x30] sm:$0xff] (!%p289_p2) }
   0xc   : > { %2108 = vmatprep.subr.bf16.mxu1 (!%p289_p2), %v2107_v17  ;;  %v655_v31 = vld [vmem:[%s2700_s3 + $0x38] sm:$0xff] (!%p289_p2)  ;;  %v656_v33 = vld [vmem:[%s2700_s3 + $0x40] sm:$0xff] (!%p289_p2)  ;;  %v657_v34 = vld [vmem:[%s2700_s3 + $0x48] sm:$0xff] (!%p289_p2)  ;;  %v2095_v35 = vpack.c.bf16 (!%p289_p2), %v381_v28, %v380_v26 }
   0xd   : > { %s2708_s17 = smov (!%p325_p3, %s1549_s17), 63  ;;  %2078 = vmatpush3.bf16.msra.mxu0 %v2075_v5  ;;  %v2115_v32 = vpack.c.bf16 %v655_v31, %v654_v30  ;;  %v382_v36 = vld [vmem:[%s2698_s1 + $0x70] sm:$0xff]  ;;  %v383_v37 = vld [vmem:[%s2698_s1 + $0x78] sm:$0xff]  ;;  %v2119_v38 = vpack.c.bf16 %v657_v34, %v656_v33  ;;  %v660_v43 = vld [vmem:[%s2700_s3 + $0x60] sm:$0xff] }
   0xe   : > { %s1550_s26 = sshll.u32 %s2708_s17, 3  ;;  %2080 = vmatprep.subr.bf16.mxu0 %v2079_v8  ;;  %v658_v39 = vld [vmem:[%s2700_s3 + $0x50] sm:$0xff]  ;;  %v659_v40 = vld [vmem:[%s2700_s3 + $0x58] sm:$0xff]  ;;  %v2099_v41 = vpack.c.bf16 %v383_v37, %v382_v36  ;;  %v661_v44 = vld [vmem:[%s2700_s3 + $0x68] sm:$0xff] }
   0xf   : > { %s2311_s15 = scalar_lea.vmem %s2697_s0, %s1550_s26  ;;  %2110 = vmatpush3.bf16.msra.mxu1 %v2107_v17  ;;  %v2123_v42 = vpack.c.bf16 %v659_v40, %v658_v39  ;;  %v2127_v45 = vpack.c.bf16 %v661_v44, %v660_v43  ;;  %v662_v13 = vld [vmem:[%s2700_s3 + $0x70] sm:$0xff]  ;;  %v663_v14 = vld [vmem:[%s2700_s3 + $0x78] sm:$0xff]  ;;  %v929_v17 = vld [vmem:[%s2702_s5 + $0x8] sm:$0xff]  ;;  %s2628_s10 = scalar_lea.vmem %s2706_s9, %s1550_s26 }
  0x10   : > { %v336_v16 = vld [vmem:[%s2311_s15] sm:$0xff]  ;;  %2112 = vmatprep.subr.bf16.mxu1 %v2111_v29  ;;  %v337_v46 = vld [vmem:[%s2311_s15 + $0x8] sm:$0xff]  ;;  %v338_v47 = vld [vmem:[%s2311_s15 + $0x10] sm:$0xff]  ;;  %v2131_v15 = vpack.c.bf16 %v663_v14, %v662_v13 }
  0x11   : > { %1783 = vmatprep.mubr.f32.mxu0 %v336_v16  ;;  %2082 = vmatpush3.bf16.msra.mxu0 %v2079_v8  ;;  %v339_v48 = vld [vmem:[%s2311_s15 + $0x18] sm:$0xff]  ;;  %v340_v49 = vld [vmem:[%s2311_s15 + $0x20] sm:$0xff]  ;;  %v341_v50 = vld [vmem:[%s2311_s15 + $0x28] sm:$0xff] }
  0x12   : > { %2084 = vmatprep.subr.bf16.mxu0 %v2083_v18  ;;  %v342_v51 = vld [vmem:[%s2311_s15 + $0x30] sm:$0xff]  ;;  %v343_v52 = vld [vmem:[%s2311_s15 + $0x38] sm:$0xff]  ;;  %v344_v53 = vld [vmem:[%s2311_s15 + $0x40] sm:$0xff] }
  0x13   : > { %2114 = vmatpush3.bf16.msra.mxu1 %v2111_v29  ;;  %v345_v54 = vld [vmem:[%s2311_s15 + $0x48] sm:$0xff]  ;;  %v346_v55 = vld [vmem:[%s2311_s15 + $0x50] sm:$0xff]  ;;  %v347_v56 = vld [vmem:[%s2311_s15 + $0x58] sm:$0xff] }
  0x14   : > { %2116 = vmatprep.subr.bf16.mxu1 %v2115_v32  ;;  %v348_v57 = vld [vmem:[%s2311_s15 + $0x60] sm:$0xff]  ;;  %v349_v58 = vld [vmem:[%s2311_s15 + $0x68] sm:$0xff]  ;;  %v350_v59 = vld [vmem:[%s2311_s15 + $0x70] sm:$0xff] }
  0x15   : > { %2086 = vmatpush3.bf16.msra.mxu0 %v2083_v18  ;;  %v351_v60 = vld [vmem:[%s2311_s15 + $0x78] sm:$0xff]  ;;  %v352_v61 = vld [vmem:[%s2311_s15 + $0x80] sm:$0xff]  ;;  %v353_v62 = vld [vmem:[%s2311_s15 + $0x88] sm:$0xff] }
  0x16   : > { %2088 = vmatprep.subr.bf16.mxu0 %v2087_v21  ;;  %v354_v63 = vld [vmem:[%s2311_s15 + $0x90] sm:$0xff]  ;;  %v355_v0 = vld [vmem:[%s2311_s15 + $0x98] sm:$0xff]  ;;  %v356_v1 = vld [vmem:[%s2311_s15 + $0xa0] sm:$0xff] }
  0x17   : > { %2118 = vmatpush3.bf16.msra.mxu1 %v2115_v32  ;;  %v357_v2 = vld [vmem:[%s2311_s15 + $0xa8] sm:$0xff]  ;;  %v358_v3 = vld [vmem:[%s2311_s15 + $0xb0] sm:$0xff]  ;;  %v359_v4 = vld [vmem:[%s2311_s15 + $0xb8] sm:$0xff] }
  0x18   : > { %2120 = vmatprep.subr.bf16.mxu1 %v2119_v38  ;;  %v360_v5 = vld [vmem:[%s2311_s15 + $0xc0] sm:$0xff]  ;;  %v361_v6 = vld [vmem:[%s2311_s15 + $0xc8] sm:$0xff]  ;;  %v362_v7 = vld [vmem:[%s2311_s15 + $0xd0] sm:$0xff] }
  0x19   : > { %2090 = vmatpush3.bf16.msra.mxu0 %v2087_v21  ;;  %v363_v8 = vld [vmem:[%s2311_s15 + $0xd8] sm:$0xff]  ;;  %v364_v9 = vld [vmem:[%s2311_s15 + $0xe0] sm:$0xff]  ;;  %v365_v10 = vld [vmem:[%s2311_s15 + $0xe8] sm:$0xff] }
  0x1a   : > { %2092 = vmatprep.subr.bf16.mxu0 %v2091_v25  ;;  %v366_v11 = vld [vmem:[%s2311_s15 + $0xf0] sm:$0xff]  ;;  %v367_v12 = vld [vmem:[%s2311_s15 + $0xf8] sm:$0xff]  ;;  %v928_v16 = vld [vmem:[%s2702_s5] sm:$0xff] }
  0x1b   : > { %2122 = vmatpush3.bf16.msra.mxu1 %v2119_v38  ;;  %v930_v18 = vld [vmem:[%s2702_s5 + $0x10] sm:$0xff]  ;;  %v2135_v19 = vpack.c.bf16 %v929_v17, %v928_v16  ;;  %v931_v20 = vld [vmem:[%s2702_s5 + $0x18] sm:$0xff]  ;;  %v932_v22 = vld [vmem:[%s2702_s5 + $0x20] sm:$0xff] }
  0x1c   : > { %2124 = vmatprep.subr.bf16.mxu1 %v2123_v42  ;;  %v2139_v21 = vpack.c.bf16 %v931_v20, %v930_v18  ;;  %v933_v23 = vld [vmem:[%s2702_s5 + $0x28] sm:$0xff]  ;;  %v935_v26 = vld [vmem:[%s2702_s5 + $0x38] sm:$0xff]  ;;  %v936_v28 = vld [vmem:[%s2702_s5 + $0x40] sm:$0xff] }
  0x1d   : > { %2094 = vmatpush3.bf16.msra.mxu0 %v2091_v25  ;;  %v2143_v24 = vpack.c.bf16 %v933_v23, %v932_v22  ;;  %v934_v25 = vld [vmem:[%s2702_s5 + $0x30] sm:$0xff]  ;;  %v937_v29 = vld [vmem:[%s2702_s5 + $0x48] sm:$0xff]  ;;  %v939_v32 = vld [vmem:[%s2702_s5 + $0x58] sm:$0xff] }
  0x1e   : > { %2096 = vmatprep.subr.bf16.mxu0 %v2095_v35  ;;  %v2147_v27 = vpack.c.bf16 %v935_v26, %v934_v25  ;;  %v2151_v30 = vpack.c.bf16 %v937_v29, %v936_v28  ;;  %v938_v31 = vld [vmem:[%s2702_s5 + $0x50] sm:$0xff]  ;;  %v940_v34 = vld [vmem:[%s2702_s5 + $0x60] sm:$0xff]  ;;  %v943_v38 = vld [vmem:[%s2702_s5 + $0x78] sm:$0xff] }
  0x1f   : > { %2126 = vmatpush3.bf16.msra.mxu1 %v2123_v42  ;;  %v2155_v33 = vpack.c.bf16 %v939_v32, %v938_v31  ;;  %v942_v37 = vld [vmem:[%s2702_s5 + $0x70] sm:$0xff]  ;;  %v2462_v40 = vld [vmem:[%s2699_s2] ss:$0 sm:$0xff] }
  0x20   : > { %2128 = vmatprep.subr.bf16.mxu1 %v2127_v45  ;;  %v2163_v39 = vpack.c.bf16 %v943_v38, %v942_v37 }
  0x21   : > { %2098 = vmatpush3.bf16.msra.mxu0 %v2095_v35  ;;  %v941_v35 = vld [vmem:[%s2702_s5 + $0x68] sm:$0xff] }
  0x22   : > { %2100 = vmatprep.subr.bf16.mxu0 %v2099_v41  ;;  %v2159_v36 = vpack.c.bf16 %v941_v35, %v940_v34 }
  0x23   : > { %2130 = vmatpush3.bf16.msra.mxu1 %v2127_v45 }
  0x24   : > { %2132 = vmatprep.subr.bf16.mxu1 %v2131_v15 }
  0x25   : > { %2102 = vmatpush3.bf16.msra.mxu0 %v2099_v41 }
  0x26   : > { %2136 = vmatprep.subr.bf16.mxu0 %v2135_v19 }
  0x27   : > { %2134 = vmatpush3.bf16.msra.mxu1 %v2131_v15 }
  0x28   : > { %1784 = vmatmul.mubr.f32.vlgmr.msra.gmra.mrb[0].mxu0 %v337_v46 }
  0x29   : > { %1786 = vmatprep.mubr.f32.mxu0 %v338_v47  ;;  %2138 = vmatpush3.bf16.msra.mxu0 %v2135_v19 }
  0x2a   : > { %2140 = vmatprep.subr.bf16.mxu0 %v2139_v21 }
  0x2c   : > { %1787 = vmatmul.mubr.f32.gmra.mrb[2].mxu0 %v339_v48 }
  0x2d   : > { %1789 = vmatprep.mubr.f32.mxu0 %v340_v49  ;;  %2142 = vmatpush3.bf16.msra.mxu0 %v2139_v21 }
  0x2e   : > { %2144 = vmatprep.subr.bf16.mxu0 %v2143_v24 }
  0x30   : > { %1790 = vmatmul.mubr.f32.gmra.mrb[4].mxu0 %v341_v50 }
  0x31   : > { %1792 = vmatprep.mubr.f32.mxu0 %v342_v51  ;;  %2146 = vmatpush3.bf16.msra.mxu0 %v2143_v24 }
  0x32   : > { %2148 = vmatprep.subr.bf16.mxu0 %v2147_v27 }
  0x34   : > { %1793 = vmatmul.mubr.f32.gmra.mrb[6].mxu0 %v343_v52 }
  0x35   : > { %1795 = vmatprep.mubr.f32.mxu0 %v344_v53  ;;  %2150 = vmatpush3.bf16.msra.mxu0 %v2147_v27 }
  0x36   : > { %2152 = vmatprep.subr.bf16.mxu0 %v2151_v30 }
  0x38   : > { %1796 = vmatmul.mubr.f32.gmra.mrb[8].mxu0 %v345_v54 }
  0x39   : > { %1798 = vmatprep.mubr.f32.mxu0 %v346_v55  ;;  %2154 = vmatpush3.bf16.msra.mxu0 %v2151_v30 }
  0x3a   : > { %2156 = vmatprep.subr.bf16.mxu0 %v2155_v33 }
  0x3c   : > { %1799 = vmatmul.mubr.f32.gmra.mrb[10].mxu0 %v347_v56 }
  0x3d   : > { %1801 = vmatprep.mubr.f32.mxu0 %v348_v57  ;;  %2158 = vmatpush3.bf16.msra.mxu0 %v2155_v33 }
  0x3e   : > { %2160 = vmatprep.subr.bf16.mxu0 %v2159_v36 }
  0x40   : > { %1802 = vmatmul.mubr.f32.gmra.mrb[12].mxu0 %v349_v58 }
  0x41   : > { %1804 = vmatprep.mubr.f32.mxu0 %v350_v59  ;;  %2162 = vmatpush3.bf16.msra.mxu0 %v2159_v36 }
  0x42   : > { %2164 = vmatprep.subr.bf16.mxu0 %v2163_v39 }
  0x44   : > { %1805 = vmatmul.mubr.f32.gmra.mrb[14].mxu0 %v351_v60 }
  0x45   : > { %1807 = vmatprep.mubr.f32.mxu0 %v352_v61  ;;  %2166 = vmatpush3.bf16.msra.mxu0 %v2163_v39 }
  0x48   : > { %1808 = vmatmul.mubr.f32.gmra.mrb[16].mxu0 %v353_v62 }
  0x49   : > { %1810 = vmatprep.mubr.f32.mxu0 %v354_v63 }
  0x4c   : > { %1811 = vmatmul.mubr.f32.gmra.mrb[18].mxu0 %v355_v0 }
  0x4d   : > { %1813 = vmatprep.mubr.f32.mxu0 %v356_v1 }
  0x50   : > { %1814 = vmatmul.mubr.f32.gmra.mrb[20].mxu0 %v357_v2 }
  0x51   : > { %1816 = vmatprep.mubr.f32.mxu0 %v358_v3 }
  0x54   : > { %1817 = vmatmul.mubr.f32.gmra.mrb[22].mxu0 %v359_v4 }
  0x55   : > { %1819 = vmatprep.mubr.f32.mxu0 %v360_v5 }
  0x58   : > { %1820 = vmatmul.mubr.f32.gmra.mrb[24].mxu0 %v361_v6 }
  0x59   : > { %1822 = vmatprep.mubr.f32.mxu0 %v362_v7 }
  0x5c   : > { %1823 = vmatmul.mubr.f32.gmra.mrb[26].mxu0 %v363_v8 }
  0x5d   : > { %1825 = vmatprep.mubr.f32.mxu0 %v364_v9 }
  0x60   : > { %1826 = vmatmul.mubr.f32.gmra.mrb[28].mxu0 %v365_v10 }
  0x61   : > { %1828 = vmatprep.mubr.f32.mxu0 %v366_v11 }
  0x64   : > { %1829 = vmatmul.mubr.f32.gmra.mrb[30].mxu0 %v367_v12 }
  0xfb   : > { %v1785_v41 = vpop.f32.mrb[0].mxu0 }
  0xfc   : > { %v463_v42 = vadd.f32 %v1785_v41, %v2462_v40  ;;  %v457_v43 = vpop.f32.mrb[1].mxu0 }
  0xfd   : > { %v458_v44 = vadd.f32 %v2462_v40, %v457_v43 }
  0xfe   : > { %v617_v47 = vmax.f32 %v463_v42, 0.0 }
  0xff   : > { %v1788_v45 = vpop.f32.mrb[2].mxu0  ;;  %v616_v46 = vmax.f32 %v458_v44, 0.0 }
 0x100   : > { %v473_v48 = vadd.f32 %v1788_v45, %v2462_v40  ;;  %v467_v49 = vpop.f32.mrb[3].mxu0 }
 0x101   : > { %v468_v50 = vadd.f32 %v2462_v40, %v467_v49  ;;  %1863 = vmatprep.mubr.f32.mxu1 %v616_v46 }
 0x102   : > { %1864 = vmatmul.mubr.f32.vlgmr.msra.gmra.mrb[0].mxu1 %v617_v47  ;;  %v619_v53 = vmax.f32 %v473_v48, 0.0 }
 0x103   : > { %v618_v51 = vmax.f32 %v468_v50, 0.0  ;;  %v1791_v52 = vpop.f32.mrb[4].mxu0 }
 0x104   : > { %v483_v54 = vadd.f32 %v1791_v52, %v2462_v40  ;;  %v477_v55 = vpop.f32.mrb[5].mxu0 }
 0x105   : > { %v478_v56 = vadd.f32 %v2462_v40, %v477_v55  ;;  %1866 = vmatprep.mubr.f32.mxu1 %v618_v51 }
 0x106   : > { %1867 = vmatmul.mubr.f32.gmra.mrb[2].mxu1 %v619_v53  ;;  %v621_v59 = vmax.f32 %v483_v54, 0.0 }
 0x107   : > { %v620_v57 = vmax.f32 %v478_v56, 0.0  ;;  %v1794_v58 = vpop.f32.mrb[6].mxu0 }
 0x108   : > { %v493_v60 = vadd.f32 %v1794_v58, %v2462_v40  ;;  %v487_v61 = vpop.f32.mrb[7].mxu0 }
 0x109   : > { %v488_v62 = vadd.f32 %v2462_v40, %v487_v61  ;;  %1869 = vmatprep.mubr.f32.mxu1 %v620_v57 }
 0x10a   : > { %1870 = vmatmul.mubr.f32.gmra.mrb[4].mxu1 %v621_v59  ;;  %v623_v1 = vmax.f32 %v493_v60, 0.0 }
 0x10b   : > { %v622_v63 = vmax.f32 %v488_v62, 0.0  ;;  %v1797_v0 = vpop.f32.mrb[8].mxu0 }
 0x10c   : > { %v503_v2 = vadd.f32 %v1797_v0, %v2462_v40  ;;  %v497_v3 = vpop.f32.mrb[9].mxu0 }
 0x10d   : > { %v498_v4 = vadd.f32 %v2462_v40, %v497_v3  ;;  %1872 = vmatprep.mubr.f32.mxu1 %v622_v63 }
 0x10e   : > { %1873 = vmatmul.mubr.f32.gmra.mrb[6].mxu1 %v623_v1  ;;  %v625_v7 = vmax.f32 %v503_v2, 0.0 }
 0x10f   : > { %v624_v5 = vmax.f32 %v498_v4, 0.0  ;;  %v1800_v6 = vpop.f32.mrb[10].mxu0 }
 0x110   : > { %v513_v8 = vadd.f32 %v1800_v6, %v2462_v40  ;;  %v507_v9 = vpop.f32.mrb[11].mxu0 }
 0x111   : > { %v508_v10 = vadd.f32 %v2462_v40, %v507_v9  ;;  %1875 = vmatprep.mubr.f32.mxu1 %v624_v5 }
 0x112   : > { %1876 = vmatmul.mubr.f32.gmra.mrb[8].mxu1 %v625_v7  ;;  %v627_v13 = vmax.f32 %v513_v8, 0.0 }
 0x113   : > { %v626_v11 = vmax.f32 %v508_v10, 0.0  ;;  %v1803_v12 = vpop.f32.mrb[12].mxu0  ;;  %v1208_v10 = vld [vmem:[%s2704_s7] sm:$0xff] }
 0x114   : > { %v523_v14 = vadd.f32 %v1803_v12, %v2462_v40  ;;  %v517_v15 = vpop.f32.mrb[13].mxu0  ;;  %v1210_v12 = vld [vmem:[%s2704_s7 + $0x10] sm:$0xff] }
 0x115   : > { %v518_v16 = vadd.f32 %v2462_v40, %v517_v15  ;;  %1878 = vmatprep.mubr.f32.mxu1 %v626_v11  ;;  %v1209_v11 = vld [vmem:[%s2704_s7 + $0x8] sm:$0xff]  ;;  %v1212_v15 = vld [vmem:[%s2704_s7 + $0x20] sm:$0xff] }
 0x116   : > { %1879 = vmatmul.mubr.f32.gmra.mrb[10].mxu1 %v627_v13  ;;  %v629_v19 = vmax.f32 %v523_v14, 0.0  ;;  %v2167_v13 = vpack.c.bf16 %v1209_v11, %v1208_v10 }
 0x117   : > { %v628_v17 = vmax.f32 %v518_v16, 0.0  ;;  %v1806_v18 = vpop.f32.mrb[14].mxu0  ;;  %v1213_v16 = vld [vmem:[%s2704_s7 + $0x28] sm:$0xff] }
 0x118   : > { %v533_v20 = vadd.f32 %v1806_v18, %v2462_v40  ;;  %v527_v21 = vpop.f32.mrb[15].mxu0  ;;  %2168 = vmatprep.subr.bf16.mxu1 %v2167_v13  ;;  %v1214_v18 = vld [vmem:[%s2704_s7 + $0x30] sm:$0xff] }
 0x119   : > { %v528_v22 = vadd.f32 %v2462_v40, %v527_v21  ;;  %1881 = vmatprep.mubr.f32.mxu1 %v628_v17  ;;  %2170 = vmatpush3.bf16.msra.mxu1 %v2167_v13  ;;  %v2175_v17 = vpack.c.bf16 %v1213_v16, %v1212_v15  ;;  %v1216_v21 = vld [vmem:[%s2704_s7 + $0x40] sm:$0xff] }
 0x11a   : > { %1882 = vmatmul.mubr.f32.gmra.mrb[12].mxu1 %v629_v19  ;;  %v631_v25 = vmax.f32 %v533_v20, 0.0  ;;  %v1215_v19 = vld [vmem:[%s2704_s7 + $0x38] sm:$0xff] }
 0x11b   : > { %v630_v23 = vmax.f32 %v528_v22, 0.0  ;;  %v1809_v24 = vpop.f32.mrb[16].mxu0  ;;  %v2179_v20 = vpack.c.bf16 %v1215_v19, %v1214_v18  ;;  %v1217_v22 = vld [vmem:[%s2704_s7 + $0x48] sm:$0xff] }
 0x11c   : > { %v543_v26 = vadd.f32 %v1809_v24, %v2462_v40  ;;  %v537_v27 = vpop.f32.mrb[17].mxu0  ;;  %v1218_v24 = vld [vmem:[%s2704_s7 + $0x50] sm:$0xff] }
 0x11d   : > { %v538_v28 = vadd.f32 %v2462_v40, %v537_v27  ;;  %1884 = vmatprep.mubr.f32.mxu1 %v630_v23  ;;  %v2183_v23 = vpack.c.bf16 %v1217_v22, %v1216_v21  ;;  %v1220_v27 = vld [vmem:[%s2704_s7 + $0x60] sm:$0xff] }
 0x11e   : > { %1885 = vmatmul.mubr.f32.gmra.mrb[14].mxu1 %v631_v25  ;;  %v633_v31 = vmax.f32 %v543_v26, 0.0  ;;  %v1219_v25 = vld [vmem:[%s2704_s7 + $0x58] sm:$0xff] }
 0x11f   : > { %v632_v29 = vmax.f32 %v538_v28, 0.0  ;;  %v1812_v30 = vpop.f32.mrb[18].mxu0  ;;  %v2187_v26 = vpack.c.bf16 %v1219_v25, %v1218_v24  ;;  %v1221_v28 = vld [vmem:[%s2704_s7 + $0x68] sm:$0xff] }
 0x120   : > { %v553_v32 = vadd.f32 %v1812_v30, %v2462_v40  ;;  %v547_v33 = vpop.f32.mrb[19].mxu0  ;;  %v1222_v30 = vld [vmem:[%s2704_s7 + $0x70] sm:$0xff] }
 0x121   : > { %v548_v34 = vadd.f32 %v2462_v40, %v547_v33  ;;  %1887 = vmatprep.mubr.f32.mxu1 %v632_v29  ;;  %v2191_v29 = vpack.c.bf16 %v1221_v28, %v1220_v27  ;;  %v2547_v33 = vld [vmem:[%s2701_s4] ss:$0 sm:$0xff] }
 0x122   : > { %1888 = vmatmul.mubr.f32.gmra.mrb[16].mxu1 %v633_v31  ;;  %v635_v37 = vmax.f32 %v553_v32, 0.0  ;;  %v1223_v31 = vld [vmem:[%s2704_s7 + $0x78] sm:$0xff] }
 0x123   : > { %v634_v35 = vmax.f32 %v548_v34, 0.0  ;;  %v1815_v36 = vpop.f32.mrb[20].mxu0  ;;  %v2195_v32 = vpack.c.bf16 %v1223_v31, %v1222_v30 }
 0x124   : > { %v563_v38 = vadd.f32 %v1815_v36, %v2462_v40  ;;  %v557_v39 = vpop.f32.mrb[21].mxu0 }
 0x125   : > { %v558_v41 = vadd.f32 %v2462_v40, %v557_v39  ;;  %1890 = vmatprep.mubr.f32.mxu1 %v634_v35 }
 0x126   : > { %1891 = vmatmul.mubr.f32.gmra.mrb[18].mxu1 %v635_v37  ;;  %v637_v44 = vmax.f32 %v563_v38, 0.0 }
 0x127   : > { %v636_v42 = vmax.f32 %v558_v41, 0.0  ;;  %v1818_v43 = vpop.f32.mrb[22].mxu0 }
 0x128   : > { %v573_v45 = vadd.f32 %v1818_v43, %v2462_v40  ;;  %v567_v46 = vpop.f32.mrb[23].mxu0 }
 0x129   : > { %v568_v47 = vadd.f32 %v2462_v40, %v567_v46  ;;  %1893 = vmatprep.mubr.f32.mxu1 %v636_v42 }
 0x12a   : > { %1894 = vmatmul.mubr.f32.gmra.mrb[20].mxu1 %v637_v44  ;;  %v639_v50 = vmax.f32 %v573_v45, 0.0 }
 0x12b   : > { %v638_v48 = vmax.f32 %v568_v47, 0.0  ;;  %v1821_v49 = vpop.f32.mrb[24].mxu0 }
 0x12c   : > { %v583_v51 = vadd.f32 %v1821_v49, %v2462_v40  ;;  %v577_v52 = vpop.f32.mrb[25].mxu0 }
 0x12d   : > { %v578_v53 = vadd.f32 %v2462_v40, %v577_v52  ;;  %1896 = vmatprep.mubr.f32.mxu1 %v638_v48 }
 0x12e   : > { %1897 = vmatmul.mubr.f32.gmra.mrb[22].mxu1 %v639_v50  ;;  %v641_v56 = vmax.f32 %v583_v51, 0.0 }
 0x12f   : > { %v640_v54 = vmax.f32 %v578_v53, 0.0  ;;  %v1824_v55 = vpop.f32.mrb[26].mxu0 }
 0x130   : > { %v593_v57 = vadd.f32 %v1824_v55, %v2462_v40  ;;  %v587_v58 = vpop.f32.mrb[27].mxu0 }
 0x131   : > { %v588_v59 = vadd.f32 %v2462_v40, %v587_v58  ;;  %1899 = vmatprep.mubr.f32.mxu1 %v640_v54 }
 0x132   : > { %1900 = vmatmul.mubr.f32.gmra.mrb[24].mxu1 %v641_v56  ;;  %v643_v62 = vmax.f32 %v593_v57, 0.0 }
 0x133   : > { %v642_v60 = vmax.f32 %v588_v59, 0.0  ;;  %v1827_v61 = vpop.f32.mrb[28].mxu0 }
 0x134   : > { %v603_v63 = vadd.f32 %v1827_v61, %v2462_v40  ;;  %v597_v0 = vpop.f32.mrb[29].mxu0 }
 0x135   : > { %v598_v1 = vadd.f32 %v2462_v40, %v597_v0  ;;  %1902 = vmatprep.mubr.f32.mxu1 %v642_v60 }
 0x136   : > { %1903 = vmatmul.mubr.f32.gmra.mrb[26].mxu1 %v643_v62  ;;  %v645_v4 = vmax.f32 %v603_v63, 0.0 }
 0x137   : > { %v644_v2 = vmax.f32 %v598_v1, 0.0  ;;  %v1830_v3 = vpop.f32.mrb[30].mxu0 }
 0x138   : > { %v613_v5 = vadd.f32 %v1830_v3, %v2462_v40  ;;  %v607_v6 = vpop.f32.mrb[31].mxu0 }
 0x139   : > { %v608_v7 = vadd.f32 %v2462_v40, %v607_v6  ;;  %1905 = vmatprep.mubr.f32.mxu1 %v644_v2  ;;  %v1211_v40 = vld [vmem:[%s2704_s7 + $0x18] sm:$0xff] }
 0x13a   : > { %1906 = vmatmul.mubr.f32.gmra.mrb[28].mxu1 %v645_v4  ;;  %v647_v9 = vmax.f32 %v613_v5, 0.0  ;;  %v2171_v14 = vpack.c.bf16 %v1211_v40, %v1210_v12 }
 0x13b   : > { %v646_v8 = vmax.f32 %v608_v7, 0.0 }
 0x13c   : > { %2172 = vmatprep.subr.bf16.mxu1 %v2171_v14 }
 0x13d   : > { %1908 = vmatprep.mubr.f32.mxu1 %v646_v8  ;;  %2174 = vmatpush3.bf16.msra.mxu1 %v2171_v14 }
 0x13e   : > { %1909 = vmatmul.mubr.f32.gmra.mrb[30].mxu1 %v647_v9  ;;  %2176 = vmatprep.subr.bf16.mxu1 %v2175_v17 }
 0x141   : > { %2178 = vmatpush3.bf16.msra.mxu1 %v2175_v17 }
 0x142   : > { %2180 = vmatprep.subr.bf16.mxu1 %v2179_v20 }
 0x145   : > { %2182 = vmatpush3.bf16.msra.mxu1 %v2179_v20 }
 0x146   : > { %2184 = vmatprep.subr.bf16.mxu1 %v2183_v23 }
 0x149   : > { %2186 = vmatpush3.bf16.msra.mxu1 %v2183_v23 }
 0x14a   : > { %2188 = vmatprep.subr.bf16.mxu1 %v2187_v26 }
 0x14d   : > { %2190 = vmatpush3.bf16.msra.mxu1 %v2187_v26 }
 0x14e   : > { %2192 = vmatprep.subr.bf16.mxu1 %v2191_v29 }
 0x151   : > { %2194 = vmatpush3.bf16.msra.mxu1 %v2191_v29 }
 0x152   : > { %2196 = vmatprep.subr.bf16.mxu1 %v2195_v32 }
 0x155   : > { %2198 = vmatpush3.bf16.msra.mxu1 %v2195_v32 }
 0x1d5   : > { %v1865_v34 = vpop.f32.mrb[0].mxu1 }
 0x1d6   : > { %v743_v35 = vadd.f32 %v1865_v34, %v2547_v33  ;;  %v737_v36 = vpop.f32.mrb[1].mxu1 }
 0x1d7   : > { %v738_v37 = vadd.f32 %v2547_v33, %v737_v36 }
 0x1d8   : > { %v897_v41 = vmax.f32 %v743_v35, 0.0 }
 0x1d9   : > { %v896_v38 = vmax.f32 %v738_v37, 0.0  ;;  %v1868_v39 = vpop.f32.mrb[2].mxu1 }
 0x1da   : > { %v753_v42 = vadd.f32 %v1868_v39, %v2547_v33  ;;  %v747_v43 = vpop.f32.mrb[3].mxu1 }
 0x1db   : > { %v748_v44 = vadd.f32 %v2547_v33, %v747_v43  ;;  %1943 = vmatprep.mubr.f32.mxu0 %v896_v38 }
 0x1dc   : > { %1944 = vmatmul.mubr.f32.vlgmr.msra.gmra.mrb[32].mxu0 %v897_v41  ;;  %v899_v47 = vmax.f32 %v753_v42, 0.0 }
 0x1dd   : > { %v898_v45 = vmax.f32 %v748_v44, 0.0  ;;  %v1871_v46 = vpop.f32.mrb[4].mxu1 }
 0x1de   : > { %v763_v48 = vadd.f32 %v1871_v46, %v2547_v33  ;;  %v757_v49 = vpop.f32.mrb[5].mxu1 }
 0x1df   : > { %v758_v50 = vadd.f32 %v2547_v33, %v757_v49  ;;  %1946 = vmatprep.mubr.f32.mxu0 %v898_v45 }
 0x1e0   : > { %1947 = vmatmul.mubr.f32.gmra.mrb[34].mxu0 %v899_v47  ;;  %v901_v53 = vmax.f32 %v763_v48, 0.0 }
 0x1e1   : > { %v900_v51 = vmax.f32 %v758_v50, 0.0  ;;  %v1874_v52 = vpop.f32.mrb[6].mxu1 }
 0x1e2   : > { %v773_v54 = vadd.f32 %v1874_v52, %v2547_v33  ;;  %v767_v55 = vpop.f32.mrb[7].mxu1 }
 0x1e3   : > { %v768_v56 = vadd.f32 %v2547_v33, %v767_v55  ;;  %1949 = vmatprep.mubr.f32.mxu0 %v900_v51 }
 0x1e4   : > { %1950 = vmatmul.mubr.f32.gmra.mrb[36].mxu0 %v901_v53  ;;  %v903_v59 = vmax.f32 %v773_v54, 0.0 }
 0x1e5   : > { %v902_v57 = vmax.f32 %v768_v56, 0.0  ;;  %v1877_v58 = vpop.f32.mrb[8].mxu1 }
 0x1e6   : > { %v783_v60 = vadd.f32 %v1877_v58, %v2547_v33  ;;  %v777_v61 = vpop.f32.mrb[9].mxu1 }
 0x1e7   : > { %v778_v62 = vadd.f32 %v2547_v33, %v777_v61  ;;  %1952 = vmatprep.mubr.f32.mxu0 %v902_v57 }
 0x1e8   : > { %1953 = vmatmul.mubr.f32.gmra.mrb[38].mxu0 %v903_v59  ;;  %v905_v1 = vmax.f32 %v783_v60, 0.0 }
 0x1e9   : > { %v904_v63 = vmax.f32 %v778_v62, 0.0  ;;  %v1880_v0 = vpop.f32.mrb[10].mxu1 }
 0x1ea   : > { %v793_v2 = vadd.f32 %v1880_v0, %v2547_v33  ;;  %v787_v3 = vpop.f32.mrb[11].mxu1 }
 0x1eb   : > { %v788_v4 = vadd.f32 %v2547_v33, %v787_v3  ;;  %1955 = vmatprep.mubr.f32.mxu0 %v904_v63 }
 0x1ec   : > { %1956 = vmatmul.mubr.f32.gmra.mrb[40].mxu0 %v905_v1  ;;  %v907_v7 = vmax.f32 %v793_v2, 0.0 }
 0x1ed   : > { %v906_v5 = vmax.f32 %v788_v4, 0.0  ;;  %v1883_v6 = vpop.f32.mrb[12].mxu1  ;;  %v2584_v4 = vld [vmem:[%s2703_s6] ss:$0 sm:$0xff] }
 0x1ee   : > { %v803_v8 = vadd.f32 %v1883_v6, %v2547_v33  ;;  %v797_v9 = vpop.f32.mrb[13].mxu1 }
 0x1ef   : > { %v798_v10 = vadd.f32 %v2547_v33, %v797_v9  ;;  %1958 = vmatprep.mubr.f32.mxu0 %v906_v5 }
 0x1f0   : > { %1959 = vmatmul.mubr.f32.gmra.mrb[42].mxu0 %v907_v7  ;;  %v909_v13 = vmax.f32 %v803_v8, 0.0 }
 0x1f1   : > { %v908_v11 = vmax.f32 %v798_v10, 0.0  ;;  %v1886_v12 = vpop.f32.mrb[14].mxu1 }
 0x1f2   : > { %v813_v40 = vadd.f32 %v1886_v12, %v2547_v33  ;;  %v807_v14 = vpop.f32.mrb[15].mxu1 }
 0x1f3   : > { %v808_v15 = vadd.f32 %v2547_v33, %v807_v14  ;;  %1961 = vmatprep.mubr.f32.mxu0 %v908_v11 }
 0x1f4   : > { %1962 = vmatmul.mubr.f32.gmra.mrb[44].mxu0 %v909_v13  ;;  %v911_v18 = vmax.f32 %v813_v40, 0.0 }
 0x1f5   : > { %v910_v16 = vmax.f32 %v808_v15, 0.0  ;;  %v1889_v17 = vpop.f32.mrb[16].mxu1 }
 0x1f6   : > { %v823_v19 = vadd.f32 %v1889_v17, %v2547_v33  ;;  %v817_v20 = vpop.f32.mrb[17].mxu1 }
 0x1f7   : > { %v818_v21 = vadd.f32 %v2547_v33, %v817_v20  ;;  %1964 = vmatprep.mubr.f32.mxu0 %v910_v16 }
 0x1f8   : > { %1965 = vmatmul.mubr.f32.gmra.mrb[46].mxu0 %v911_v18  ;;  %v913_v24 = vmax.f32 %v823_v19, 0.0 }
 0x1f9   : > { %v912_v22 = vmax.f32 %v818_v21, 0.0  ;;  %v1892_v23 = vpop.f32.mrb[18].mxu1 }
 0x1fa   : > { %v833_v25 = vadd.f32 %v1892_v23, %v2547_v33  ;;  %v827_v26 = vpop.f32.mrb[19].mxu1 }
 0x1fb   : > { %v828_v27 = vadd.f32 %v2547_v33, %v827_v26  ;;  %1967 = vmatprep.mubr.f32.mxu0 %v912_v22 }
 0x1fc   : > { %1968 = vmatmul.mubr.f32.gmra.mrb[48].mxu0 %v913_v24  ;;  %v915_v30 = vmax.f32 %v833_v25, 0.0 }
 0x1fd   : > { %v914_v28 = vmax.f32 %v828_v27, 0.0  ;;  %v1895_v29 = vpop.f32.mrb[20].mxu1 }
 0x1fe   : > { %v843_v31 = vadd.f32 %v1895_v29, %v2547_v33  ;;  %v837_v32 = vpop.f32.mrb[21].mxu1 }
 0x1ff   : > { %v838_v34 = vadd.f32 %v2547_v33, %v837_v32  ;;  %1970 = vmatprep.mubr.f32.mxu0 %v914_v28 }
 0x200   : > { %1971 = vmatmul.mubr.f32.gmra.mrb[50].mxu0 %v915_v30  ;;  %v917_v37 = vmax.f32 %v843_v31, 0.0 }
 0x201   : > { %v916_v35 = vmax.f32 %v838_v34, 0.0  ;;  %v1898_v36 = vpop.f32.mrb[22].mxu1 }
 0x202   : > { %v853_v38 = vadd.f32 %v1898_v36, %v2547_v33  ;;  %v847_v39 = vpop.f32.mrb[23].mxu1 }
 0x203   : > { %v848_v41 = vadd.f32 %v2547_v33, %v847_v39  ;;  %1973 = vmatprep.mubr.f32.mxu0 %v916_v35 }
 0x204   : > { %1974 = vmatmul.mubr.f32.gmra.mrb[52].mxu0 %v917_v37  ;;  %v919_v44 = vmax.f32 %v853_v38, 0.0 }
 0x205   : > { %v918_v42 = vmax.f32 %v848_v41, 0.0  ;;  %v1901_v43 = vpop.f32.mrb[24].mxu1 }
 0x206   : > { %v863_v45 = vadd.f32 %v1901_v43, %v2547_v33  ;;  %v857_v46 = vpop.f32.mrb[25].mxu1 }
 0x207   : > { %v858_v47 = vadd.f32 %v2547_v33, %v857_v46  ;;  %1976 = vmatprep.mubr.f32.mxu0 %v918_v42 }
 0x208   : > { %1977 = vmatmul.mubr.f32.gmra.mrb[54].mxu0 %v919_v44  ;;  %v921_v50 = vmax.f32 %v863_v45, 0.0 }
 0x209   : > { %v920_v48 = vmax.f32 %v858_v47, 0.0  ;;  %v1904_v49 = vpop.f32.mrb[26].mxu1 }
 0x20a   : > { %v873_v51 = vadd.f32 %v1904_v49, %v2547_v33  ;;  %v867_v52 = vpop.f32.mrb[27].mxu1 }
 0x20b   : > { %v868_v53 = vadd.f32 %v2547_v33, %v867_v52  ;;  %1979 = vmatprep.mubr.f32.mxu0 %v920_v48 }
 0x20c   : > { %1980 = vmatmul.mubr.f32.gmra.mrb[56].mxu0 %v921_v50  ;;  %v923_v56 = vmax.f32 %v873_v51, 0.0 }
 0x20d   : > { %v922_v54 = vmax.f32 %v868_v53, 0.0  ;;  %v1907_v55 = vpop.f32.mrb[28].mxu1 }
 0x20e   : > { %v883_v57 = vadd.f32 %v1907_v55, %v2547_v33  ;;  %v877_v58 = vpop.f32.mrb[29].mxu1 }
 0x20f   : > { %v878_v59 = vadd.f32 %v2547_v33, %v877_v58  ;;  %1982 = vmatprep.mubr.f32.mxu0 %v922_v54 }
 0x210   : > { %1983 = vmatmul.mubr.f32.gmra.mrb[58].mxu0 %v923_v56  ;;  %v925_v62 = vmax.f32 %v883_v57, 0.0 }
 0x211   : > { %v924_v60 = vmax.f32 %v878_v59, 0.0  ;;  %v1910_v61 = vpop.f32.mrb[30].mxu1 }
 0x212   : > { %v893_v63 = vadd.f32 %v1910_v61, %v2547_v33  ;;  %v887_v0 = vpop.f32.mrb[31].mxu1 }
 0x213   : > { %v888_v1 = vadd.f32 %v2547_v33, %v887_v0  ;;  %1985 = vmatprep.mubr.f32.mxu0 %v924_v60 }
 0x214   : > { %1986 = vmatmul.mubr.f32.gmra.mrb[60].mxu0 %v925_v62  ;;  %v927_v3 = vmax.f32 %v893_v63, 0.0 }
 0x215   : > { %v926_v2 = vmax.f32 %v888_v1, 0.0 }
 0x217   : > { %1988 = vmatprep.mubr.f32.mxu0 %v926_v2 }
 0x218   : > { %1989 = vmatmul.mubr.f32.gmra.mrb[62].mxu0 %v927_v3 }
 0x2af   : > { %v1945_v5 = vpop.f32.mrb[32].mxu0 }
 0x2b0   : > { %v1023_v6 = vadd.f32 %v1945_v5, %v2584_v4  ;;  %v1017_v7 = vpop.f32.mrb[33].mxu0 }
 0x2b1   : > { %v1018_v8 = vadd.f32 %v2584_v4, %v1017_v7 }
 0x2b2   : > { %v1177_v33 = vmax.f32 %v1023_v6, 0.0 }
 0x2b3   : > { %v1176_v9 = vmax.f32 %v1018_v8, 0.0  ;;  %v1948_v10 = vpop.f32.mrb[34].mxu0 }
 0x2b4   : > { %v1033_v11 = vadd.f32 %v1948_v10, %v2584_v4  ;;  %v1027_v12 = vpop.f32.mrb[35].mxu0 }
 0x2b5   : > { %v1028_v13 = vadd.f32 %v2584_v4, %v1027_v12  ;;  %2023 = vmatprep.mubr.f32.mxu1 %v1176_v9 }
 0x2b6   : > { %2024 = vmatmul.mubr.f32.vlgmr.msra.gmra.mrb[32].mxu1 %v1177_v33  ;;  %v1179_v15 = vmax.f32 %v1033_v11, 0.0 }
 0x2b7   : > { %v1178_v40 = vmax.f32 %v1028_v13, 0.0  ;;  %v1951_v14 = vpop.f32.mrb[36].mxu0 }
 0x2b8   : > { %v1043_v16 = vadd.f32 %v1951_v14, %v2584_v4  ;;  %v1037_v17 = vpop.f32.mrb[37].mxu0 }
 0x2b9   : > { %v1038_v18 = vadd.f32 %v2584_v4, %v1037_v17  ;;  %2026 = vmatprep.mubr.f32.mxu1 %v1178_v40 }
 0x2ba   : > { %2027 = vmatmul.mubr.f32.gmra.mrb[34].mxu1 %v1179_v15  ;;  %v1181_v21 = vmax.f32 %v1043_v16, 0.0 }
 0x2bb   : > { %v1180_v19 = vmax.f32 %v1038_v18, 0.0  ;;  %v1954_v20 = vpop.f32.mrb[38].mxu0 }
 0x2bc   : > { %v1053_v22 = vadd.f32 %v1954_v20, %v2584_v4  ;;  %v1047_v23 = vpop.f32.mrb[39].mxu0 }
 0x2bd   : > { %v1048_v24 = vadd.f32 %v2584_v4, %v1047_v23  ;;  %2029 = vmatprep.mubr.f32.mxu1 %v1180_v19 }
 0x2be   : > { %2030 = vmatmul.mubr.f32.gmra.mrb[36].mxu1 %v1181_v21  ;;  %v1183_v27 = vmax.f32 %v1053_v22, 0.0 }
 0x2bf   : > { %v1182_v25 = vmax.f32 %v1048_v24, 0.0  ;;  %v1957_v26 = vpop.f32.mrb[40].mxu0 }
 0x2c0   : > { %v1063_v28 = vadd.f32 %v1957_v26, %v2584_v4  ;;  %v1057_v29 = vpop.f32.mrb[41].mxu0 }
 0x2c1   : > { %v1058_v30 = vadd.f32 %v2584_v4, %v1057_v29  ;;  %2032 = vmatprep.mubr.f32.mxu1 %v1182_v25 }
 0x2c2   : > { %2033 = vmatmul.mubr.f32.gmra.mrb[38].mxu1 %v1183_v27  ;;  %v1185_v34 = vmax.f32 %v1063_v28, 0.0 }
 0x2c3   : > { %v1184_v31 = vmax.f32 %v1058_v30, 0.0  ;;  %v1960_v32 = vpop.f32.mrb[42].mxu0 }
 0x2c4   : > { %v1073_v35 = vadd.f32 %v1960_v32, %v2584_v4  ;;  %v1067_v36 = vpop.f32.mrb[43].mxu0 }
 0x2c5   : > { %v1068_v37 = vadd.f32 %v2584_v4, %v1067_v36  ;;  %2035 = vmatprep.mubr.f32.mxu1 %v1184_v31 }
 0x2c6   : > { %2036 = vmatmul.mubr.f32.gmra.mrb[40].mxu1 %v1185_v34  ;;  %v1187_v41 = vmax.f32 %v1073_v35, 0.0 }
 0x2c7   : > { %v1186_v38 = vmax.f32 %v1068_v37, 0.0  ;;  %v1963_v39 = vpop.f32.mrb[44].mxu0  ;;  %v2621_v37 = vld [vmem:[%s2705_s8] ss:$0 sm:$0xff] }
 0x2c8   : > { %v1083_v42 = vadd.f32 %v1963_v39, %v2584_v4  ;;  %v1077_v43 = vpop.f32.mrb[45].mxu0 }
 0x2c9   : > { %v1078_v44 = vadd.f32 %v2584_v4, %v1077_v43  ;;  %2038 = vmatprep.mubr.f32.mxu1 %v1186_v38 }
 0x2ca   : > { %2039 = vmatmul.mubr.f32.gmra.mrb[42].mxu1 %v1187_v41  ;;  %v1189_v47 = vmax.f32 %v1083_v42, 0.0 }
 0x2cb   : > { %v1188_v45 = vmax.f32 %v1078_v44, 0.0  ;;  %v1966_v46 = vpop.f32.mrb[46].mxu0 }
 0x2cc   : > { %v1093_v48 = vadd.f32 %v1966_v46, %v2584_v4  ;;  %v1087_v49 = vpop.f32.mrb[47].mxu0 }
 0x2cd   : > { %v1088_v50 = vadd.f32 %v2584_v4, %v1087_v49  ;;  %2041 = vmatprep.mubr.f32.mxu1 %v1188_v45 }
 0x2ce   : > { %2042 = vmatmul.mubr.f32.gmra.mrb[44].mxu1 %v1189_v47  ;;  %v1191_v53 = vmax.f32 %v1093_v48, 0.0 }
 0x2cf   : > { %v1190_v51 = vmax.f32 %v1088_v50, 0.0  ;;  %v1969_v52 = vpop.f32.mrb[48].mxu0 }
 0x2d0   : > { %v1103_v54 = vadd.f32 %v1969_v52, %v2584_v4  ;;  %v1097_v55 = vpop.f32.mrb[49].mxu0 }
 0x2d1   : > { %v1098_v56 = vadd.f32 %v2584_v4, %v1097_v55  ;;  %2044 = vmatprep.mubr.f32.mxu1 %v1190_v51 }
 0x2d2   : > { %2045 = vmatmul.mubr.f32.gmra.mrb[46].mxu1 %v1191_v53  ;;  %v1193_v59 = vmax.f32 %v1103_v54, 0.0 }
 0x2d3   : > { %v1192_v57 = vmax.f32 %v1098_v56, 0.0  ;;  %v1972_v58 = vpop.f32.mrb[50].mxu0 }
 0x2d4   : > { %v1113_v60 = vadd.f32 %v1972_v58, %v2584_v4  ;;  %v1107_v61 = vpop.f32.mrb[51].mxu0 }
 0x2d5   : > { %v1108_v62 = vadd.f32 %v2584_v4, %v1107_v61  ;;  %2047 = vmatprep.mubr.f32.mxu1 %v1192_v57 }
 0x2d6   : > { %2048 = vmatmul.mubr.f32.gmra.mrb[48].mxu1 %v1193_v59  ;;  %v1195_v1 = vmax.f32 %v1113_v60, 0.0 }
 0x2d7   : > { %v1194_v63 = vmax.f32 %v1108_v62, 0.0  ;;  %v1975_v0 = vpop.f32.mrb[52].mxu0 }
 0x2d8   : > { %v1123_v2 = vadd.f32 %v1975_v0, %v2584_v4  ;;  %v1117_v3 = vpop.f32.mrb[53].mxu0 }
 0x2d9   : > { %v1118_v5 = vadd.f32 %v2584_v4, %v1117_v3  ;;  %2050 = vmatprep.mubr.f32.mxu1 %v1194_v63 }
 0x2da   : > { %2051 = vmatmul.mubr.f32.gmra.mrb[50].mxu1 %v1195_v1  ;;  %v1197_v8 = vmax.f32 %v1123_v2, 0.0 }
 0x2db   : > { %v1196_v6 = vmax.f32 %v1118_v5, 0.0  ;;  %v1978_v7 = vpop.f32.mrb[54].mxu0 }
 0x2dc   : > { %v1133_v9 = vadd.f32 %v1978_v7, %v2584_v4  ;;  %v1127_v10 = vpop.f32.mrb[55].mxu0 }
 0x2dd   : > { %v1128_v33 = vadd.f32 %v2584_v4, %v1127_v10  ;;  %2053 = vmatprep.mubr.f32.mxu1 %v1196_v6 }
 0x2de   : > { %2054 = vmatmul.mubr.f32.gmra.mrb[52].mxu1 %v1197_v8  ;;  %v1199_v13 = vmax.f32 %v1133_v9, 0.0 }
 0x2df   : > { %v1198_v11 = vmax.f32 %v1128_v33, 0.0  ;;  %v1981_v12 = vpop.f32.mrb[56].mxu0 }
 0x2e0   : > { %v1143_v40 = vadd.f32 %v1981_v12, %v2584_v4  ;;  %v1137_v14 = vpop.f32.mrb[57].mxu0 }
 0x2e1   : > { %v1138_v15 = vadd.f32 %v2584_v4, %v1137_v14  ;;  %2056 = vmatprep.mubr.f32.mxu1 %v1198_v11 }
 0x2e2   : > { %2057 = vmatmul.mubr.f32.gmra.mrb[54].mxu1 %v1199_v13  ;;  %v1201_v18 = vmax.f32 %v1143_v40, 0.0 }
 0x2e3   : > { %v1200_v16 = vmax.f32 %v1138_v15, 0.0  ;;  %v1984_v17 = vpop.f32.mrb[58].mxu0 }
 0x2e4   : > { %v1153_v19 = vadd.f32 %v1984_v17, %v2584_v4  ;;  %v1147_v20 = vpop.f32.mrb[59].mxu0 }
 0x2e5   : > { %v1148_v21 = vadd.f32 %v2584_v4, %v1147_v20  ;;  %2059 = vmatprep.mubr.f32.mxu1 %v1200_v16 }
 0x2e6   : > { %2060 = vmatmul.mubr.f32.gmra.mrb[56].mxu1 %v1201_v18  ;;  %v1203_v24 = vmax.f32 %v1153_v19, 0.0 }
 0x2e7   : > { %v1202_v22 = vmax.f32 %v1148_v21, 0.0  ;;  %v1987_v23 = vpop.f32.mrb[60].mxu0 }
 0x2e8   : > { %v1163_v25 = vadd.f32 %v1987_v23, %v2584_v4  ;;  %v1157_v26 = vpop.f32.mrb[61].mxu0 }
 0x2e9   : > { %v1158_v27 = vadd.f32 %v2584_v4, %v1157_v26  ;;  %2062 = vmatprep.mubr.f32.mxu1 %v1202_v22 }
 0x2ea   : > { %2063 = vmatmul.mubr.f32.gmra.mrb[58].mxu1 %v1203_v24  ;;  %v1205_v30 = vmax.f32 %v1163_v25, 0.0 }
 0x2eb   : > { %v1204_v28 = vmax.f32 %v1158_v27, 0.0  ;;  %v1990_v29 = vpop.f32.mrb[62].mxu0 }
 0x2ec   : > { %v1173_v31 = vadd.f32 %v1990_v29, %v2584_v4  ;;  %v1167_v32 = vpop.f32.mrb[63].mxu0 }
 0x2ed   : > { %v1168_v34 = vadd.f32 %v2584_v4, %v1167_v32  ;;  %2065 = vmatprep.mubr.f32.mxu1 %v1204_v28 }
 0x2ee   : > { %2066 = vmatmul.mubr.f32.gmra.mrb[60].mxu1 %v1205_v30  ;;  %v1207_v36 = vmax.f32 %v1173_v31, 0.0 }
 0x2ef   : > { %v1206_v35 = vmax.f32 %v1168_v34, 0.0 }
 0x2f1   : > { %2068 = vmatprep.mubr.f32.mxu1 %v1206_v35 }
 0x2f2   : > { %2069 = vmatmul.mubr.f32.gmra.mrb[62].mxu1 %v1207_v36 }
 0x389   : > { %v2025_v4 = vpop.f32.mrb[32].mxu1 }
 0x38a   : > { %v1303_v38 = vadd.f32 %v2025_v4, %v2621_v37  ;;  %v1297_v39 = vpop.f32.mrb[33].mxu1 }
 0x38b   : > { %v1298_v41 = vadd.f32 %v2621_v37, %v1297_v39 }
 0x38c   : > { %1457 = vst [vmem:[%s2628_s10 + $0x8] sm:$0xff] %v1303_v38 }
 0x38d   : > { %1456 = vst [vmem:[%s2628_s10] sm:$0xff] %v1298_v41  ;;  %v2028_v42 = vpop.f32.mrb[34].mxu1 }
 0x38e   : > { %v1313_v43 = vadd.f32 %v2028_v42, %v2621_v37  ;;  %v1307_v44 = vpop.f32.mrb[35].mxu1 }
 0x38f   : > { %v1308_v45 = vadd.f32 %v2621_v37, %v1307_v44 }
 0x390   : > { %1459 = vst [vmem:[%s2628_s10 + $0x18] sm:$0xff] %v1313_v43 }
 0x391   : > { %1458 = vst [vmem:[%s2628_s10 + $0x10] sm:$0xff] %v1308_v45  ;;  %v2031_v46 = vpop.f32.mrb[36].mxu1 }
 0x392   : > { %v1323_v47 = vadd.f32 %v2031_v46, %v2621_v37  ;;  %v1317_v48 = vpop.f32.mrb[37].mxu1 }
 0x393   : > { %v1318_v49 = vadd.f32 %v2621_v37, %v1317_v48 }
 0x394   : > { %1461 = vst [vmem:[%s2628_s10 + $0x28] sm:$0xff] %v1323_v47 }
 0x395   : > { %1460 = vst [vmem:[%s2628_s10 + $0x20] sm:$0xff] %v1318_v49  ;;  %v2034_v50 = vpop.f32.mrb[38].mxu1 }
 0x396   : > { %v1333_v51 = vadd.f32 %v2034_v50, %v2621_v37  ;;  %v1327_v52 = vpop.f32.mrb[39].mxu1 }
 0x397   : > { %v1328_v53 = vadd.f32 %v2621_v37, %v1327_v52 }
 0x398   : > { %1463 = vst [vmem:[%s2628_s10 + $0x38] sm:$0xff] %v1333_v51 }
 0x399   : > { %1462 = vst [vmem:[%s2628_s10 + $0x30] sm:$0xff] %v1328_v53  ;;  %v2037_v54 = vpop.f32.mrb[40].mxu1 }
 0x39a   : > { %v1343_v55 = vadd.f32 %v2037_v54, %v2621_v37  ;;  %v1337_v56 = vpop.f32.mrb[41].mxu1 }
 0x39b   : > { %v1338_v57 = vadd.f32 %v2621_v37, %v1337_v56 }
 0x39c   : > { %1465 = vst [vmem:[%s2628_s10 + $0x48] sm:$0xff] %v1343_v55 }
 0x39d   : > { %1464 = vst [vmem:[%s2628_s10 + $0x40] sm:$0xff] %v1338_v57  ;;  %v2040_v58 = vpop.f32.mrb[42].mxu1 }
 0x39e   : > { %v1353_v59 = vadd.f32 %v2040_v58, %v2621_v37  ;;  %v1347_v60 = vpop.f32.mrb[43].mxu1 }
 0x39f   : > { %v1348_v61 = vadd.f32 %v2621_v37, %v1347_v60 }
 0x3a0   : > { %1467 = vst [vmem:[%s2628_s10 + $0x58] sm:$0xff] %v1353_v59 }
 0x3a1   : > { %1466 = vst [vmem:[%s2628_s10 + $0x50] sm:$0xff] %v1348_v61  ;;  %v2043_v62 = vpop.f32.mrb[44].mxu1 }
 0x3a2   : > { %v1363_v63 = vadd.f32 %v2043_v62, %v2621_v37  ;;  %v1357_v0 = vpop.f32.mrb[45].mxu1 }
 0x3a3   : > { %v1358_v1 = vadd.f32 %v2621_v37, %v1357_v0 }
 0x3a4   : > { %1469 = vst [vmem:[%s2628_s10 + $0x68] sm:$0xff] %v1363_v63 }
 0x3a5   : > { %1468 = vst [vmem:[%s2628_s10 + $0x60] sm:$0xff] %v1358_v1  ;;  %v2046_v2 = vpop.f32.mrb[46].mxu1 }
 0x3a6   : > { %v1373_v3 = vadd.f32 %v2046_v2, %v2621_v37  ;;  %v1367_v5 = vpop.f32.mrb[47].mxu1 }
 0x3a7   : > { %v1368_v6 = vadd.f32 %v2621_v37, %v1367_v5 }
 0x3a8   : > { %1471 = vst [vmem:[%s2628_s10 + $0x78] sm:$0xff] %v1373_v3 }
 0x3a9   : > { %1470 = vst [vmem:[%s2628_s10 + $0x70] sm:$0xff] %v1368_v6  ;;  %v2049_v7 = vpop.f32.mrb[48].mxu1 }
 0x3aa   : > { %v1383_v8 = vadd.f32 %v2049_v7, %v2621_v37  ;;  %v1377_v9 = vpop.f32.mrb[49].mxu1 }
 0x3ab   : > { %v1378_v10 = vadd.f32 %v2621_v37, %v1377_v9 }
 0x3ac   : > { %1473 = vst [vmem:[%s2628_s10 + $0x88] sm:$0xff] %v1383_v8 }
 0x3ad   : > { %1472 = vst [vmem:[%s2628_s10 + $0x80] sm:$0xff] %v1378_v10  ;;  %v2052_v33 = vpop.f32.mrb[50].mxu1 }
 0x3ae   : > { %v1393_v11 = vadd.f32 %v2052_v33, %v2621_v37  ;;  %v1387_v12 = vpop.f32.mrb[51].mxu1 }
 0x3af   : > { %v1388_v13 = vadd.f32 %v2621_v37, %v1387_v12 }
 0x3b0   : > { %1475 = vst [vmem:[%s2628_s10 + $0x98] sm:$0xff] %v1393_v11 }
 0x3b1   : > { %1474 = vst [vmem:[%s2628_s10 + $0x90] sm:$0xff] %v1388_v13  ;;  %v2055_v40 = vpop.f32.mrb[52].mxu1 }
 0x3b2   : > { %v1403_v14 = vadd.f32 %v2055_v40, %v2621_v37  ;;  %v1397_v15 = vpop.f32.mrb[53].mxu1 }
 0x3b3   : > { %v1398_v16 = vadd.f32 %v2621_v37, %v1397_v15 }
 0x3b4   : > { %1477 = vst [vmem:[%s2628_s10 + $0xa8] sm:$0xff] %v1403_v14 }
 0x3b5   : > { %1476 = vst [vmem:[%s2628_s10 + $0xa0] sm:$0xff] %v1398_v16  ;;  %v2058_v17 = vpop.f32.mrb[54].mxu1 }
 0x3b6   : > { %v1413_v18 = vadd.f32 %v2058_v17, %v2621_v37  ;;  %v1407_v19 = vpop.f32.mrb[55].mxu1 }
 0x3b7   : > { %v1408_v20 = vadd.f32 %v2621_v37, %v1407_v19 }
 0x3b8   : > { %1479 = vst [vmem:[%s2628_s10 + $0xb8] sm:$0xff] %v1413_v18 }
 0x3b9   : > { %1478 = vst [vmem:[%s2628_s10 + $0xb0] sm:$0xff] %v1408_v20  ;;  %v2061_v21 = vpop.f32.mrb[56].mxu1 }
 0x3ba   : > { %v1423_v22 = vadd.f32 %v2061_v21, %v2621_v37  ;;  %v1417_v23 = vpop.f32.mrb[57].mxu1 }
 0x3bb   : > { %v1418_v24 = vadd.f32 %v2621_v37, %v1417_v23 }
 0x3bc   : > { %1481 = vst [vmem:[%s2628_s10 + $0xc8] sm:$0xff] %v1423_v22 }
 0x3bd   : > { %1480 = vst [vmem:[%s2628_s10 + $0xc0] sm:$0xff] %v1418_v24  ;;  %v2064_v25 = vpop.f32.mrb[58].mxu1 }
 0x3be   : > { %v1433_v26 = vadd.f32 %v2064_v25, %v2621_v37  ;;  %v1427_v27 = vpop.f32.mrb[59].mxu1 }
 0x3bf   : > { %v1428_v28 = vadd.f32 %v2621_v37, %v1427_v27 }
 0x3c0   : > { %1483 = vst [vmem:[%s2628_s10 + $0xd8] sm:$0xff] %v1433_v26 }
 0x3c1   : > { %1482 = vst [vmem:[%s2628_s10 + $0xd0] sm:$0xff] %v1428_v28  ;;  %v2067_v29 = vpop.f32.mrb[60].mxu1 }
 0x3c2   : > { %v1443_v30 = vadd.f32 %v2067_v29, %v2621_v37  ;;  %v1437_v31 = vpop.f32.mrb[61].mxu1 }
 0x3c3   : > { %v1438_v32 = vadd.f32 %v2621_v37, %v1437_v31 }
 0x3c4   : > { %1485 = vst [vmem:[%s2628_s10 + $0xe8] sm:$0xff] %v1443_v30 }
 0x3c5   : > { %1484 = vst [vmem:[%s2628_s10 + $0xe0] sm:$0xff] %v1438_v32  ;;  %v2070_v34 = vpop.f32.mrb[62].mxu1 }
 0x3c6   : > { %v1453_v35 = vadd.f32 %v2070_v34, %v2621_v37  ;;  %v1447_v36 = vpop.f32.mrb[63].mxu1 }
 0x3c7   : > { %v1448_v4 = vadd.f32 %v2621_v37, %v1447_v36 }
 0x3c8   : > { %1487 = vst [vmem:[%s2628_s10 + $0xf8] sm:$0xff] %v1453_v35 }
 0x3c9   : > { %1486 = vst [vmem:[%s2628_s10 + $0xf0] sm:$0xff] %v1448_v4 }
 0x3ca PF: > { %s19_s30 = sadd.s32 1, %s2213_s30  }
 0x3cb   : > { %p16_p4 = scmp.ge.s32.totalorder %s19_s30, 4  }
 0x3cd   :  { %18 = sbr.rel (!%p16_p4) target bundleno = 1 (0x1), region = 86 }

</bundles_post_ra>
